<compile_context>
chip_gen: v6e
topology: v6e:2x2x1
jax: 0.10.0
libtpu: 0.0.40
codegen_flags: <defaults>
</compile_context>

<pallas_src>
import math

import jax
import jax.numpy as jnp
import numpy as np
from jax.experimental import pallas as pl
from jax.experimental.pallas import tpu as pltpu


def _round_up(x, m):
    return ((x + m - 1) // m) * m


# --------------------------------------------------------------------------
# Kernel
# --------------------------------------------------------------------------
def _make_fcblock_kernel(num_layers, out_features):
    """num_layers = num_hidden_layers + 2 fused block-diagonal layers."""
    L = num_layers
    OUT = out_features

    def kernel(*refs):
        # refs = u (fused coords|branch tile), w[0..L-1], b[0..L-1], out
        u_ref = refs[0]
        w_refs = refs[1:1 + L]
        b_refs = refs[1 + L:1 + 2 * L]
        out_ref = refs[1 + 2 * L]

        z = u_ref[...]
        # hidden layers: ReLU(z @ W_fused + b_fused)
        # (the 10*param scale is pre-folded into W_fused / b_fused)
        for i in range(L - 1):
            z = jnp.dot(z, w_refs[i][...], preferred_element_type=jnp.float32)
            z = jnp.maximum(z + b_refs[i][...], 0.0)

        # fused final heads: zf = [xf | yf], each OUT lanes wide
        zf = jnp.dot(z, w_refs[L - 1][...],
                     preferred_element_type=jnp.float32) + b_refs[L - 1][...]
        # elementwise product of the two heads; reduced in an XLA epilogue
        out_ref[...] = zf[:, :OUT] * zf[:, OUT:2 * OUT]

    return kernel


# --------------------------------------------------------------------------
# One-time parameter preparation (transpose, trunk fusion, scale folding)
# --------------------------------------------------------------------------
def prepare_fcblock_params(params):
    net_w, net_b = params["net_w"], params["net_b"]
    br_w, br_b = params["br_w"], params["br_b"]
    L = len(net_w)
    H = net_w[0].shape[0]          # hidden_features
    in_f = net_w[0].shape[1]       # coords in_features
    br_in = br_w[0].shape[1]       # branch input width (30)
    out_f = net_w[-1].shape[0]     # out_features

    sv = 10.0 * params["value_params"].astype(jnp.float32)
    sb = 10.0 * params["branch_params"].astype(jnp.float32)

    ws, bs = [], []

    # layer 0: (in_f + br_in, 2H) block-structured, scales folded in
    w0 = jnp.zeros((in_f + br_in, 2 * H), jnp.float32)
    w0 = w0.at[:in_f, :H].set(sv * net_w[0].T)
    w0 = w0.at[in_f:, H:].set(sb * br_w[0].T)
    b0 = jnp.concatenate([sv * net_b[0], sb * br_b[0]]).reshape(1, 2 * H)
    ws.append(w0)
    bs.append(b0)

    # hidden layers 1..L-2: (2H, 2H) block-diagonal, scales folded in
    for i in range(1, L - 1):
        wi = jnp.zeros((2 * H, 2 * H), jnp.float32)
        wi = wi.at[:H, :H].set(sv * net_w[i].T)
        wi = wi.at[H:, H:].set(sb * br_w[i].T)
        bi = jnp.concatenate([sv * net_b[i], sb * br_b[i]]).reshape(1, 2 * H)
        ws.append(wi)
        bs.append(bi)

    # final heads: (2H, 2*out_f) block-diagonal, UNscaled (no 10*param here)
    wf = jnp.zeros((2 * H, 2 * out_f), jnp.float32)
    wf = wf.at[:H, :out_f].set(net_w[-1].T.astype(jnp.float32))
    wf = wf.at[H:, out_f:].set(br_w[-1].T.astype(jnp.float32))
    bf = jnp.concatenate([net_b[-1], br_b[-1]]).astype(jnp.float32).reshape(1, 2 * out_f)
    ws.append(wf)
    bs.append(bf)

    return {
        "w": ws,
        "b": bs,
        "num_layers": L,
        "out_features": out_f,
        "in_features": in_f,
        "branch_in": br_in,
    }


# --------------------------------------------------------------------------
# Forward wrapper
# --------------------------------------------------------------------------
def fc_block_forward(coords, input_fun, prepared, tile_m=1024):
    """Pallas implementation of FCBlock.forward (nonlinearity='relu')."""
    ws, bs = prepared["w"], prepared["b"]
    L = prepared["num_layers"]
    out_f = prepared["out_features"]

    batch_shape = coords.shape[:-1]
    M = int(np.prod(batch_shape)) if batch_shape else 1

    # fuse coords + branch input into one lane-packed stream (M, in_f + 30)
    u = jnp.concatenate(
        [coords.reshape(M, coords.shape[-1]).astype(jnp.float32),
         input_fun.reshape(M, input_fun.shape[-1]).astype(jnp.float32)],
        axis=-1)
    feat = u.shape[-1]

    # row tiling: big tiles for HBM roofline; shrink for tiny problems
    TILE_M = min(tile_m, _round_up(M, 8))
    Mp = _round_up(M, TILE_M)
    if Mp != M:
        u = jnp.pad(u, ((0, Mp - M), (0, 0)))
    grid = (Mp // TILE_M,)

    in_specs = [pl.BlockSpec((TILE_M, feat), lambda i: (i, 0))]
    in_specs += [pl.BlockSpec(w.shape, lambda i: (0, 0)) for w in ws]
    in_specs += [pl.BlockSpec(b.shape, lambda i: (0, 0)) for b in bs]

    prod = pl.pallas_call(
        _make_fcblock_kernel(L, out_f),
        out_shape=jax.ShapeDtypeStruct((Mp, out_f), jnp.float32),
        grid=grid,
        in_specs=in_specs,
        out_specs=pl.BlockSpec((TILE_M, out_f), lambda i: (i, 0)),
        compiler_params=pltpu.CompilerParams(
            dimension_semantics=("parallel",),
            vmem_limit_bytes=32 * 1024 * 1024,
        ),
    )(u, *ws, *bs)

    # cheap XLA epilogue: reduce the (M, out_f) head-product to (M, 1)
    out = jnp.sum(prod[:M], axis=-1, keepdims=True)
    return out.reshape(*batch_shape, 1)


# --------------------------------------------------------------------------
# Pure-JAX reference (mirrors the PyTorch forward, unfused / unfolded)
# --------------------------------------------------------------------------
def fc_block_reference(coords, input_fun, params):
    net_w, net_b = params["net_w"], params["net_b"]
    br_w, br_b = params["br_w"], params["br_b"]
    L = len(net_w)
    vp = params["value_params"]
    bp = params["branch_params"]
    x = coords
    y = input_fun
    for i in range(L - 1):
        x = jax.nn.relu(10.0 * vp * (x @ net_w[i].T + net_b[i]))
        y = jax.nn.relu(10.0 * bp * (y @ br_w[i].T + br_b[i]))
    xf = x @ net_w[L - 1].T + net_b[L - 1]
    yf = y @ br_w[L - 1].T + br_b[L - 1]
    return jnp.sum(xf * yf, axis=-1, keepdims=True)


# --------------------------------------------------------------------------
# Deterministic init mimicking FCBlock.__init__ (nonlinearity='relu')
# --------------------------------------------------------------------------
def init_fcblock_params(key, in_features, out_features, num_hidden_layers,
                        hidden_features, branch_in=30):
    def linear_init(key, fan_in, fan_out):
        kw, kb = jax.random.split(key)
        std = math.sqrt(2.0 / fan_in)  # kaiming_normal_, relu, fan_in
        w = std * jax.random.normal(kw, (fan_out, fan_in), dtype=jnp.float32)
        bound = 1.0 / math.sqrt(fan_in)
        b = jax.random.uniform(kb, (fan_out,), minval=-bound, maxval=bound,
                               dtype=jnp.float32)
        return w, b

    dims_net = [in_features] + [hidden_features] * (num_hidden_layers + 1) + [out_features]
    dims_br = [branch_in] + [hidden_features] * (num_hidden_layers + 1) + [out_features]

    keys = jax.random.split(key, 2 * (len(dims_net) - 1))
    net_w, net_b, br_w, br_b = [], [], [], []
    k_idx = 0
    for i in range(len(dims_net) - 1):
        w, b = linear_init(keys[k_idx], dims_net[i], dims_net[i + 1]); k_idx += 1
        net_w.append(w); net_b.append(b)
    for i in range(len(dims_br) - 1):
        w, b = linear_init(keys[k_idx], dims_br[i], dims_br[i + 1]); k_idx += 1
        br_w.append(w); br_b.append(b)

    return {
        "net_w": net_w, "net_b": net_b,
        "br_w": br_w, "br_b": br_b,
        "value_params": jnp.asarray(0.1, dtype=jnp.float32),
        "branch_params": jnp.asarray(0.1, dtype=jnp.float32),
    }


if __name__ == "__main__":
    # small config: in_features=3, out_features=16, hidden=32, 2 hidden layers
    in_features, out_features = 3, 16
    num_hidden_layers, hidden_features = 2, 32
    branch_in = 30  # fixed by the module (branch_net first layer is 30 -> hidden)

    key = jax.random.PRNGKey(0)
    kp, kc, kb = jax.random.split(key, 3)

    params = init_fcblock_params(kp, in_features, out_features,
                                 num_hidden_layers, hidden_features, branch_in)
    prepared = prepare_fcblock_params(params)   # one-time weight prep

    coords = jax.random.normal(kc, (2, 8, in_features), dtype=jnp.float32)
    input_fun = jax.random.normal(kb, (2, 8, branch_in), dtype=jnp.float32)

    out = fc_block_forward(coords, input_fun, prepared)
    out = jax.block_until_ready(out)

    ref = jax.block_until_ready(fc_block_reference(coords, input_fun, params))
    assert out.shape == (2, 8, 1), out.shape
    np.testing.assert_allclose(np.asarray(out), np.asarray(ref),
                               rtol=1e-4, atol=1e-5)

    print("KERNEL_OK")
</pallas_src>

<mosaic_0001>
module attributes {stable_mosaic.version = 11 : i64} {
  func.func @kernel(%arg0: i32, %arg1: memref<16x33xf32, #tpu.memory_space<vmem>>, %arg2: memref<33x64xf32, #tpu.memory_space<vmem>>, %arg3: memref<64x64xf32, #tpu.memory_space<vmem>>, %arg4: memref<64x64xf32, #tpu.memory_space<vmem>>, %arg5: memref<64x32xf32, #tpu.memory_space<vmem>>, %arg6: memref<1x64xf32, #tpu.memory_space<vmem>>, %arg7: memref<1x64xf32, #tpu.memory_space<vmem>>, %arg8: memref<1x64xf32, #tpu.memory_space<vmem>>, %arg9: memref<1x32xf32, #tpu.memory_space<vmem>>, %arg10: memref<16x16xf32, #tpu.memory_space<vmem>>) attributes {dimension_semantics = [#tpu.dimension_semantics<parallel>], iteration_bounds = array<i64: 1>, scalar_prefetch = 0 : i64, scratch_operands = 0 : i64, tpu.core_type = #tpu.core_type<tc>, window_params = [{transform_indices = @transform_0, window_bounds = array<i64: 16, 33>}, {pipeline_mode = #tpu.pipeline_mode<synchronous>, transform_indices = @transform_1, window_bounds = array<i64: 33, 64>}, {pipeline_mode = #tpu.pipeline_mode<synchronous>, transform_indices = @transform_2, window_bounds = array<i64: 64, 64>}, {pipeline_mode = #tpu.pipeline_mode<synchronous>, transform_indices = @transform_3, window_bounds = array<i64: 64, 64>}, {pipeline_mode = #tpu.pipeline_mode<synchronous>, transform_indices = @transform_4, window_bounds = array<i64: 64, 32>}, {pipeline_mode = #tpu.pipeline_mode<synchronous>, transform_indices = @transform_5, window_bounds = array<i64: 1, 64>}, {pipeline_mode = #tpu.pipeline_mode<synchronous>, transform_indices = @transform_6, window_bounds = array<i64: 1, 64>}, {pipeline_mode = #tpu.pipeline_mode<synchronous>, transform_indices = @transform_7, window_bounds = array<i64: 1, 64>}, {pipeline_mode = #tpu.pipeline_mode<synchronous>, transform_indices = @transform_8, window_bounds = array<i64: 1, 32>}, {transform_indices = @transform_9, window_bounds = array<i64: 16, 16>}]} {
    %c0 = arith.constant 0 : index
    %c0_0 = arith.constant 0 : index
    %0 = vector.load %arg1[%c0, %c0_0] : memref<16x33xf32, #tpu.memory_space<vmem>>, vector<16x33xf32>
    %c0_1 = arith.constant 0 : index
    %c0_2 = arith.constant 0 : index
    %1 = vector.load %arg2[%c0_1, %c0_2] : memref<33x64xf32, #tpu.memory_space<vmem>>, vector<33x64xf32>
    %cst = arith.constant dense<0.000000e+00> : vector<16x64xf32>
    %2 = tpu.matmul %0, %1, %cst {dimension_numbers = #tpu.dot_dimension_numbers<[1], [0], [0], [1], [0, 0, 1, 1], [], []>} : vector<16x33xf32>, vector<33x64xf32>, vector<16x64xf32> -> vector<16x64xf32>
    %c0_3 = arith.constant 0 : index
    %c0_4 = arith.constant 0 : index
    %3 = vector.load %arg6[%c0_3, %c0_4] : memref<1x64xf32, #tpu.memory_space<vmem>>, vector<1x64xf32>
    %4 = vector.broadcast %3 : vector<1x64xf32> to vector<16x64xf32>
    %5 = arith.addf %2, %4 : vector<16x64xf32>
    %cst_5 = arith.constant 0.000000e+00 : f32
    %6 = vector.broadcast %cst_5 : f32 to vector<16x64xf32>
    %7 = arith.maximumf %5, %6 : vector<16x64xf32>
    %c0_6 = arith.constant 0 : index
    %c0_7 = arith.constant 0 : index
    %8 = vector.load %arg3[%c0_6, %c0_7] : memref<64x64xf32, #tpu.memory_space<vmem>>, vector<64x64xf32>
    %cst_8 = arith.constant dense<0.000000e+00> : vector<16x64xf32>
    %9 = tpu.matmul %7, %8, %cst_8 {dimension_numbers = #tpu.dot_dimension_numbers<[1], [0], [0], [1], [0, 0, 1, 1], [], []>} : vector<16x64xf32>, vector<64x64xf32>, vector<16x64xf32> -> vector<16x64xf32>
    %c0_9 = arith.constant 0 : index
    %c0_10 = arith.constant 0 : index
    %10 = vector.load %arg7[%c0_9, %c0_10] : memref<1x64xf32, #tpu.memory_space<vmem>>, vector<1x64xf32>
    %11 = vector.broadcast %10 : vector<1x64xf32> to vector<16x64xf32>
    %12 = arith.addf %9, %11 : vector<16x64xf32>
    %cst_11 = arith.constant 0.000000e+00 : f32
    %13 = vector.broadcast %cst_11 : f32 to vector<16x64xf32>
    %14 = arith.maximumf %12, %13 : vector<16x64xf32>
    %c0_12 = arith.constant 0 : index
    %c0_13 = arith.constant 0 : index
    %15 = vector.load %arg4[%c0_12, %c0_13] : memref<64x64xf32, #tpu.memory_space<vmem>>, vector<64x64xf32>
    %cst_14 = arith.constant dense<0.000000e+00> : vector<16x64xf32>
    %16 = tpu.matmul %14, %15, %cst_14 {dimension_numbers = #tpu.dot_dimension_numbers<[1], [0], [0], [1], [0, 0, 1, 1], [], []>} : vector<16x64xf32>, vector<64x64xf32>, vector<16x64xf32> -> vector<16x64xf32>
    %c0_15 = arith.constant 0 : index
    %c0_16 = arith.constant 0 : index
    %17 = vector.load %arg8[%c0_15, %c0_16] : memref<1x64xf32, #tpu.memory_space<vmem>>, vector<1x64xf32>
    %18 = vector.broadcast %17 : vector<1x64xf32> to vector<16x64xf32>
    %19 = arith.addf %16, %18 : vector<16x64xf32>
    %cst_17 = arith.constant 0.000000e+00 : f32
    %20 = vector.broadcast %cst_17 : f32 to vector<16x64xf32>
    %21 = arith.maximumf %19, %20 : vector<16x64xf32>
    %c0_18 = arith.constant 0 : index
    %c0_19 = arith.constant 0 : index
    %22 = vector.load %arg5[%c0_18, %c0_19] : memref<64x32xf32, #tpu.memory_space<vmem>>, vector<64x32xf32>
    %cst_20 = arith.constant dense<0.000000e+00> : vector<16x32xf32>
    %23 = tpu.matmul %21, %22, %cst_20 {dimension_numbers = #tpu.dot_dimension_numbers<[1], [0], [0], [1], [0, 0, 1, 1], [], []>} : vector<16x64xf32>, vector<64x32xf32>, vector<16x32xf32> -> vector<16x32xf32>
    %c0_21 = arith.constant 0 : index
    %c0_22 = arith.constant 0 : index
    %24 = vector.load %arg9[%c0_21, %c0_22] : memref<1x32xf32, #tpu.memory_space<vmem>>, vector<1x32xf32>
    %25 = vector.broadcast %24 : vector<1x32xf32> to vector<16x32xf32>
    %26 = arith.addf %23, %25 : vector<16x32xf32>
    %27 = vector.extract_strided_slice %26 {offsets = [0, 0], sizes = [16, 16], strides = [1, 1]} : vector<16x32xf32> to vector<16x16xf32>
    %28 = vector.extract_strided_slice %26 {offsets = [0, 16], sizes = [16, 16], strides = [1, 1]} : vector<16x32xf32> to vector<16x16xf32>
    %29 = arith.mulf %27, %28 : vector<16x16xf32>
    %c0_23 = arith.constant 0 : index
    %c0_24 = arith.constant 0 : index
    %30 = vector.load %arg10[%c0_23, %c0_24] : memref<16x16xf32, #tpu.memory_space<vmem>>, vector<16x16xf32>
    tpu.vector_store %arg10[%c0_23, %c0_24], %29 {strides = array<i32>} : memref<16x16xf32, #tpu.memory_space<vmem>>, vector<16x16xf32>,
    return
  }
  func.func @transform_0(%arg0: i32) -> (i32, i32) {
    %c0_i32 = arith.constant 0 : i32
    %c0_i32_0 = arith.constant 0 : i32
    return %arg0, %c0_i32 : i32, i32
  }
  func.func @transform_1(%arg0: i32) -> (i32, i32) {
    %c0_i32 = arith.constant 0 : i32
    %c0_i32_0 = arith.constant 0 : i32
    %c0_i32_1 = arith.constant 0 : i32
    return %c0_i32, %c0_i32_0 : i32, i32
  }
  func.func @transform_2(%arg0: i32) -> (i32, i32) {
    %c0_i32 = arith.constant 0 : i32
    %c0_i32_0 = arith.constant 0 : i32
    %c0_i32_1 = arith.constant 0 : i32
    return %c0_i32, %c0_i32_0 : i32, i32
  }
  func.func @transform_3(%arg0: i32) -> (i32, i32) {
    %c0_i32 = arith.constant 0 : i32
    %c0_i32_0 = arith.constant 0 : i32
    %c0_i32_1 = arith.constant 0 : i32
    return %c0_i32, %c0_i32_0 : i32, i32
  }
  func.func @transform_4(%arg0: i32) -> (i32, i32) {
    %c0_i32 = arith.constant 0 : i32
    %c0_i32_0 = arith.constant 0 : i32
    %c0_i32_1 = arith.constant 0 : i32
    return %c0_i32, %c0_i32_0 : i32, i32
  }
  func.func @transform_5(%arg0: i32) -> (i32, i32) {
    %c0_i32 = arith.constant 0 : i32
    %c0_i32_0 = arith.constant 0 : i32
    %c0_i32_1 = arith.constant 0 : i32
    return %c0_i32, %c0_i32_0 : i32, i32
  }
  func.func @transform_6(%arg0: i32) -> (i32, i32) {
    %c0_i32 = arith.constant 0 : i32
    %c0_i32_0 = arith.constant 0 : i32
    %c0_i32_1 = arith.constant 0 : i32
    return %c0_i32, %c0_i32_0 : i32, i32
  }
  func.func @transform_7(%arg0: i32) -> (i32, i32) {
    %c0_i32 = arith.constant 0 : i32
    %c0_i32_0 = arith.constant 0 : i32
    %c0_i32_1 = arith.constant 0 : i32
    return %c0_i32, %c0_i32_0 : i32, i32
  }
  func.func @transform_8(%arg0: i32) -> (i32, i32) {
    %c0_i32 = arith.constant 0 : i32
    %c0_i32_0 = arith.constant 0 : i32
    %c0_i32_1 = arith.constant 0 : i32
    return %c0_i32, %c0_i32_0 : i32, i32
  }
  func.func @transform_9(%arg0: i32) -> (i32, i32) {
    %c0_i32 = arith.constant 0 : i32
    %c0_i32_0 = arith.constant 0 : i32
    return %arg0, %c0_i32 : i32, i32
  }
}

</mosaic_0001>

<bundles_post_ra>
// kernel: tpu_custom_call.1
= control target key start
LH: loop header
LB: loop body
LE: loop exit
PB: predicated region body
PF: predicated region fallthrough
CT: control target
= control target key end

     0   :  { %14 = vsyncpa [#allocation3], 0  ;;  %s827_s0 = inlined_call_operand.vmem [shape: f32[16,33], index: 0, kind: input, shape index: {}]   ;;  %s828_s1 = inlined_call_operand.hbm [shape: f32[33,64], index: 1, kind: input, shape index: {}]   ;;  %s829_s2 = inlined_call_operand.vmem [shape: f32[64,64], index: 2, kind: input, shape index: {}]   ;;  %s830_s3 = inlined_call_operand.hbm [shape: f32[64,64], index: 3, kind: input, shape index: {}]   ;;  %s831_s4 = inlined_call_operand.vmem [shape: f32[64,32], index: 4, kind: input, shape index: {}]   ;;  %s832_s5 = inlined_call_operand.vmem [shape: f32[1,64], index: 5, kind: input, shape index: {}]   ;;  %s833_s6 = inlined_call_operand.vmem [shape: f32[1,64], index: 6, kind: input, shape index: {}]   ;;  %s834_s7 = inlined_call_operand.vmem [shape: f32[1,64], index: 7, kind: input, shape index: {}]   ;;  %s835_s8 = inlined_call_operand.vmem [shape: f32[1,32], index: 8, kind: input, shape index: {}]   ;;  %s836_s9 = inlined_call_operand.hbm [shape: f32[16,16], index: 9, kind: output, shape index: {}]  }
   0x1   :  { %15 = vsyncpa [#allocation6], 0 }
   0x2   :  { %16 = vsyncpa [#allocation4], 0  ;;  %s679_s30 = smov [#allocation2]  }
   0x3   :  { %s24_s10 = sshll.u32 %s679_s30, 4  ;;  %s25_s10 = int_to_ptr.vmem [resolvable:$true] %s24_s10 }
   0x4   :  { %s621_s11 = scalar_lea.vmem %s25_s10, 640  ;;  %p626_p1 = scmp.lt.s32.totalorder %s25_s10, %s25_s10 }
   0x5   :  { %p622_p0 = scmp.ne.s32.totalorder %s25_s10, %s621_s11  ;;  %p627_p2 = scmp.lt.s32.totalorder %s621_s11, %s621_s11 }
   0x7   :  { %p628_p3 = por %p627_p2, %p626_p1 }
   0x9   :  { %p629_p4 = pnand %p628_p3, %p622_p0 }
   0xb   :  { %632 = shalt.err (!%p629_p4)
}
   0xc   :  { %s680_s12 = smov 128   ;;  %s681_s13 = smov 8  }
   0xd   :  { %30 = dma.hbm_to_vmem [thread:$0]  %s828_s1, 640, %s25_s10, [#allocation3], %s680_s12, %s680_s12, %s681_s13  }
   0xe   :  { %s682_s16 = smov [#allocation5]  }
   0xf   :  { %s38_s17 = sshll.u32 %s682_s16, 4  ;;  %s39_s17 = int_to_ptr.vmem [resolvable:$true] %s38_s17 }
  0x10   :  { %s641_s18 = scalar_lea.vmem %s39_s17, 1024  ;;  %p646_p6 = scmp.lt.s32.totalorder %s39_s17, %s39_s17 }
  0x11   :  { %p642_p5 = scmp.ne.s32.totalorder %s39_s17, %s641_s18  ;;  %p647_p7 = scmp.lt.s32.totalorder %s641_s18, %s641_s18 }
  0x13   :  { %p648_p8 = por %p647_p7, %p646_p6 }
  0x15   :  { %p649_p9 = pnand %p648_p8, %p642_p5 }
  0x17   :  { %652 = shalt.err (!%p649_p9)
}
  0x18   :  { %44 = dma.hbm_to_vmem [thread:$0]  %s830_s3, 1024, %s39_s17, [#allocation6], %s680_s12, %s680_s12, %s681_s13  }
  0x19   :  { %673 = dma.done.wait [#allocation3], 640  }
  0x1a   :  { %674 = vsyncadd [#allocation3], 4294966656 }
  0x1b   :  { %675 = dma.done.wait [#allocation6], 1024  }
  0x1c   :  { %676 = vsyncadd [#allocation6], 4294966272  ;;  %vm82_vm0 = vcmask 1040384   ;;  %vm75_vm1 = vcmask 269312   ;;  %v67_v0 = vld [vmem:[#allocation2 + $0x20] sm:$0x1] }
  0x1d   :  { %v66_v1 = vld [vmem:[#allocation2 + $0x18] sm:$0xff]  ;;  %537 = vmatprep.subr.msk.mxu0 %vm82_vm0, %v67_v0  ;;  %v61_v2 = vld [vmem:[%s827_s0] sm:$0xff]  ;;  %v65_v3 = vld [vmem:[#allocation2 + $0x10] sm:$0xff]  ;;  %vm178_vm2 = vcmask 523264   ;;  %vm466_vm3 = vcmask 130048  }
  0x1e   :  { %538 = vmatpush3.msk.msra.mxu0 %vm82_vm0, %v67_v0  ;;  %547 = vmatprep.mubr.msk.f32.mxu0 %vm75_vm1, %v61_v2  ;;  %v170_v4 = vld [vmem:[%s829_s2 + $0x38] sm:$0xff]  ;;  %v169_v5 = vld [vmem:[%s829_s2 + $0x30] sm:$0xff]  ;;  %v64_v6 = vld [vmem:[#allocation2 + $0x8] sm:$0xff] }
  0x1f   :  { %539 = vmatprep.subr.mxu0 %v66_v1  ;;  %550 = vmatprep.subr.mxu1 %v170_v4  ;;  %v168_v7 = vld [vmem:[%s829_s2 + $0x28] sm:$0xff]  ;;  %v63_v8 = vld [vmem:[#allocation2] sm:$0xff]  ;;  %v166_v11 = vld [vmem:[%s829_s2 + $0x18] sm:$0xff] }
  0x20   :  { %540 = vmatpush3.msra.mxu0 %v66_v1  ;;  %551 = vmatpush3.msra.mxu1 %v170_v4  ;;  %v167_v9 = vld [vmem:[%s829_s2 + $0x20] sm:$0xff]  ;;  %v62_v10 = vld [vmem:[%s827_s0 + $0x8] sm:$0xff]  ;;  %v165_v12 = vld [vmem:[%s829_s2 + $0x10] sm:$0xff] }
  0x21   :  { %541 = vmatprep.subr.mxu0 %v65_v3  ;;  %552 = vmatprep.subr.mxu1 %v169_v5  ;;  %v164_v13 = vld [vmem:[%s829_s2 + $0x8] sm:$0xff]  ;;  %v163_v14 = vld [vmem:[%s829_s2] sm:$0xff]  ;;  %v268_v16 = vld [vmem:[#allocation5 + $0x30] sm:$0xff] }
  0x22   :  { %542 = vmatpush3.msra.mxu0 %v65_v3  ;;  %553 = vmatpush3.msra.mxu1 %v169_v5  ;;  %v269_v15 = vld [vmem:[#allocation5 + $0x38] sm:$0xff]  ;;  %v267_v17 = vld [vmem:[#allocation5 + $0x28] sm:$0xff]  ;;  %v266_v18 = vld [vmem:[#allocation5 + $0x20] sm:$0xff] }
  0x23   :  { %543 = vmatprep.subr.mxu0 %v64_v6  ;;  %554 = vmatprep.subr.mxu1 %v168_v7  ;;  %v487_v19 = vld [vmem:[%s832_s5] ss:$0 sm:$0xff]  ;;  %v264_v27 = vld [vmem:[#allocation5 + $0x10] sm:$0xff]  ;;  %v263_v28 = vld [vmem:[#allocation5 + $0x8] sm:$0xff] }
  0x24   :  { %544 = vmatpush3.msra.mxu0 %v64_v6  ;;  %555 = vmatpush3.msra.mxu1 %v168_v7  ;;  %v265_v26 = vld [vmem:[#allocation5 + $0x18] sm:$0xff]  ;;  %v262_v29 = vld [vmem:[#allocation5] sm:$0xff]  ;;  %v367_v30 = vld [vmem:[%s831_s4 + $0x38] sm:$0xff] }
  0x25   :  { %545 = vmatprep.subr.mxu0 %v63_v8  ;;  %556 = vmatprep.subr.mxu1 %v167_v9  ;;  %v366_v31 = vld [vmem:[%s831_s4 + $0x30] sm:$0xff]  ;;  %v365_v32 = vld [vmem:[%s831_s4 + $0x28] sm:$0xff]  ;;  %v364_v33 = vld [vmem:[%s831_s4 + $0x20] sm:$0xff] }
  0x26   :  { %546 = vmatpush3.msra.mxu0 %v63_v8  ;;  %557 = vmatpush3.msra.mxu1 %v167_v9  ;;  %v491_v34 = vld [vmem:[%s833_s6] ss:$0 sm:$0xff]  ;;  %v363_v41 = vld [vmem:[%s831_s4 + $0x18] sm:$0xff]  ;;  %v362_v42 = vld [vmem:[%s831_s4 + $0x10] sm:$0xff] }
  0x27   :  { %548 = vmatmul.mubr.msk.f32.vlgmr.msra.gmra.mxu0 %vm75_vm1, %v62_v10  ;;  %558 = vmatprep.subr.mxu1 %v166_v11  ;;  %v361_v43 = vld [vmem:[%s831_s4 + $0x8] sm:$0xff]  ;;  %v360_v44 = vld [vmem:[%s831_s4] sm:$0xff]  ;;  %s683_s4 = smov 112  }
  0x28   :  { %559 = vmatpush3.msra.mxu1 %v166_v11  ;;  %569 = vmatprep.subr.mxu0 %v269_v15  ;;  %v494_v45 = vld [vmem:[%s834_s7] ss:$0 sm:$0xff]  ;;  %s684_s7 = smov [#allocation7]  }
  0x29   :  { %560 = vmatprep.subr.mxu1 %v165_v12  ;;  %570 = vmatpush3.msra.mxu0 %v269_v15  ;;  %v497_v53 = vld [vmem:[%s835_s8] ss:$0 sm:$0xff]  ;;  %s474_s18 = sshll.u32 %s684_s7, 4  ;;  %s475_s18 = int_to_ptr.vmem [resolvable:$true] %s474_s18 }
  0x2a   :  { %561 = vmatpush3.msra.mxu1 %v165_v12  ;;  %571 = vmatprep.subr.mxu0 %v268_v16  ;;  %s653_s19 = scalar_lea.vmem %s475_s18, 256  ;;  %p658_p11 = scmp.lt.s32.totalorder %s475_s18, %s475_s18 }
  0x2b   :  { %562 = vmatprep.subr.mxu1 %v164_v13  ;;  %572 = vmatpush3.msra.mxu0 %v268_v16  ;;  %p654_p10 = scmp.ne.s32.totalorder %s475_s18, %s653_s19  ;;  %p659_p12 = scmp.lt.s32.totalorder %s653_s19, %s653_s19 }
  0x2c   :  { %563 = vmatpush3.msra.mxu1 %v164_v13  ;;  %573 = vmatprep.subr.mxu0 %v267_v17 }
  0x2d   :  { %564 = vmatprep.subr.mxu1 %v163_v14  ;;  %574 = vmatpush3.msra.mxu0 %v267_v17  ;;  %p660_p13 = por %p659_p12, %p658_p11 }
  0x2e   :  { %565 = vmatpush3.msra.mxu1 %v163_v14  ;;  %575 = vmatprep.subr.mxu0 %v266_v18 }
  0x2f   :  { %576 = vmatpush3.msra.mxu0 %v266_v18  ;;  %588 = vmatprep.subr.mxu1 %v367_v30  ;;  %p661_p0 = pnand %p660_p13, %p654_p10 }
  0x30   :  { %577 = vmatprep.subr.mxu0 %v265_v26 }
  0x31   :  { %578 = vmatpush3.msra.mxu0 %v265_v26 }
  0x32   :  { %579 = vmatprep.subr.mxu0 %v264_v27 }
  0x33   :  { %580 = vmatpush3.msra.mxu0 %v264_v27 }
  0x34   :  { %581 = vmatprep.subr.mxu0 %v263_v28 }
  0x35   :  { %582 = vmatpush3.msra.mxu0 %v263_v28 }
  0x36   :  { %583 = vmatprep.subr.mxu0 %v262_v29 }
  0x37   :  { %584 = vmatpush3.msra.mxu0 %v262_v29 }
  0xe7   :  { %v549_v20 = vpop.f32.mrf.mxu0 }
  0xe8   :  { %v158_v21 = vadd.f32 %v549_v20, %v487_v19 }
  0xe9   :  { %v152_v22 = vpop.f32.mrf.mxu0 }
  0xea   :  { %v153_v23 = vadd.f32 %v487_v19, %v152_v22  ;;  %v162_v25 = vmax.f32 %v158_v21, 0.0 }
  0xec   :  { %v161_v24 = vmax.f32 %v153_v23, 0.0 }
  0xee   :  { %566 = vmatprep.mubr.msk.f32.mxu1 %vm178_vm2, %v161_v24 }
  0xef   :  { %567 = vmatmul.mubr.msk.f32.vlgmr.msra.gmra.mxu1 %vm178_vm2, %v162_v25 }
  0xf0   :  { %589 = vmatpush3.msra.mxu1 %v367_v30 }
  0xf1   :  { %590 = vmatprep.subr.mxu1 %v366_v31 }
  0xf2   :  { %591 = vmatpush3.msra.mxu1 %v366_v31 }
  0xf3   :  { %592 = vmatprep.subr.mxu1 %v365_v32 }
  0xf4   :  { %593 = vmatpush3.msra.mxu1 %v365_v32 }
  0xf5   :  { %594 = vmatprep.subr.mxu1 %v364_v33 }
  0xf6   :  { %595 = vmatpush3.msra.mxu1 %v364_v33 }
  0xf7   :  { %596 = vmatprep.subr.mxu1 %v363_v41 }
  0xf8   :  { %597 = vmatpush3.msra.mxu1 %v363_v41 }
  0xf9   :  { %598 = vmatprep.subr.mxu1 %v362_v42 }
  0xfa   :  { %599 = vmatpush3.msra.mxu1 %v362_v42 }
  0xfb   :  { %600 = vmatprep.subr.mxu1 %v361_v43 }
  0xfc   :  { %601 = vmatpush3.msra.mxu1 %v361_v43 }
  0xfd   :  { %602 = vmatprep.subr.mxu1 %v360_v44 }
  0xfe   :  { %603 = vmatpush3.msra.mxu1 %v360_v44 }
 0x1af   :  { %v568_v35 = vpop.f32.mrf.mxu1 }
 0x1b0   :  { %v257_v36 = vadd.f32 %v568_v35, %v491_v34 }
 0x1b1   :  { %v251_v37 = vpop.f32.mrf.mxu1 }
 0x1b2   :  { %v252_v38 = vadd.f32 %v491_v34, %v251_v37  ;;  %v261_v40 = vmax.f32 %v257_v36, 0.0 }
 0x1b4   :  { %v260_v39 = vmax.f32 %v252_v38, 0.0 }
 0x1b6   :  { %585 = vmatprep.mubr.msk.f32.mxu0 %vm178_vm2, %v260_v39 }
 0x1b7   :  { %586 = vmatmul.mubr.msk.f32.vlgmr.msra.gmra.mxu0 %vm178_vm2, %v261_v40 }
 0x277   :  { %v587_v46 = vpop.f32.mrf.mxu0 }
 0x278   :  { %v355_v47 = vadd.f32 %v587_v46, %v494_v45 }
 0x279   :  { %v349_v48 = vpop.f32.mrf.mxu0 }
 0x27a   :  { %v350_v49 = vadd.f32 %v494_v45, %v349_v48  ;;  %v359_v51 = vmax.f32 %v355_v47, 0.0 }
 0x27c   :  { %v358_v50 = vmax.f32 %v350_v49, 0.0 }
 0x27e   :  { %604 = vmatprep.mubr.msk.f32.mxu1 %vm178_vm2, %v358_v50 }
 0x27f   :  { %605 = vmatmul.mubr.msk.f32.vlgmr.msra.gmra.mxu1 %vm178_vm2, %v359_v51 }
 0x33f   :  { %v606_v52 = vpop.f32.mrf.mxu1 }
 0x340   :  { %v453_v56 = vadd.f32 %v606_v52, %v497_v53 }
 0x341   :  { %v447_v54 = vpop.f32.mrf.mxu1 }
 0x342   :  { %v448_v55 = vadd.f32 %v497_v53, %v447_v54 }
 0x344   :  { %458 = vrot.lane.b32.xlu0 %v448_v55, %s683_s4 }
 0x348   :  { %460 = vrot.lane.b32.xlu0 %v453_v56, %s683_s4 }
 0x3b6   :  { %v459_v57 = vpop.permute.xlu0 %458 }
 0x3b7   :  { %v464_v58 = vmul.f32 %v459_v57, %v448_v55 }
 0x3b9   :  { %467 = vst.msk [vmem:[#allocation7] sm:$0xff] %vm466_vm3, %v464_v58 }
 0x3ba   :  { %v461_v59 = vpop.permute.xlu0 %460 }
 0x3bb   :  { %v465_v60 = vmul.f32 %v461_v59, %v453_v56 }
 0x3bd   :  { %468 = vst.msk [vmem:[#allocation7 + $0x8] sm:$0xff] %vm466_vm3, %v465_v60 }
 0x3be   :  { %664 = shalt.err (!%p661_p0)
}
 0x3bf   :  { %480 = dma.vmem_to_hbm [thread:$0]  %s475_s18, 256, %s836_s9, [#allocation4], %s680_s12, %s680_s12, %s681_s13  }
 0x3c0   :  { %677 = dma.done.wait [#allocation4], 256  }
 0x3c1   :  { %678 = vsyncadd [#allocation4], 4294967040 }
 0x3c2   :  { %484 = vsyncpa [#allocation3], 1 }
 0x3c3   :  { %485 = vsyncpa [#allocation6], 1 }
 0x3c4   :  { %486 = vsyncpa [#allocation4], 1 }

</bundles_post_ra>
